<compile_context>
chip_gen: v7x
topology: tpu7x:2x2x1
jax: 0.10.0
libtpu: 0.0.40
codegen_flags: <defaults>
</compile_context>

<pallas_src>
from functools import partial

import jax
import jax.numpy as jnp
from jax import lax
from jax.experimental import pallas as pl
from jax.experimental.pallas import tpu as pltpu


def _tuple_loss_kernel(labels_ref, x_ref, out_ref, acc_ref, *,
                       batch_size, tuple_size, batch_block, blocks_per_core):
    # labels_ref: (bt, 1)     float32 VMEM
    # x_ref:      (bt, T, F)  float32 VMEM
    # out_ref:    (8, 128)    float32 VMEM (per-core partial-sum tile)
    # acc_ref:    (1, 1)      float32 VMEM scratch (running sum over blocks)
    eps = jnp.float32(1e-6)
    eps_sq = eps * eps
    inv_enroll = jnp.float32(1.0 / (tuple_size - 1))

    c = pl.program_id(0)          # "parallel" axis: independent partial sums
    j = pl.program_id(1)          # "arbitrary" axis: reduction over batch blocks

    @pl.when(j == 0)
    def _():
        acc_ref[...] = jnp.zeros_like(acc_ref)

    x = x_ref[...]                                      # (bt, T, F)
    wi_eval = x[:, 0, :]                                # (bt, F)  == w[b, 0]
    # centroid of enrolment rows = (sum over tuple - eval row) / (T - 1)
    c_k = (jnp.sum(x, axis=1) - wi_eval) * inv_enroll   # (bt, F)  == mean(w[b, 1:])

    # All bt cosine similarities at once: VPU multiplies + lane reduces.
    dot = jnp.sum(c_k * wi_eval, axis=-1, keepdims=True)          # (bt, 1)
    n1_sq = jnp.sum(c_k * c_k, axis=-1, keepdims=True)            # (bt, 1)
    n2_sq = jnp.sum(wi_eval * wi_eval, axis=-1, keepdims=True)    # (bt, 1)
    # torch.nn.CosineSimilarity(eps=1e-6):
    #   dot / (max(||a||, eps) * max(||b||, eps))
    # = dot * rsqrt(max(||a||^2, eps^2) * max(||b||^2, eps^2))    (rsqrt -> EUP)
    denom_sq = jnp.maximum(n1_sq, eps_sq) * jnp.maximum(n2_sq, eps_sq)
    cos = dot * lax.rsqrt(denom_sq)                               # (bt, 1)

    # sigmoid(x) = 0.5 * (1 + tanh(x / 2)): tanh lands on the EUP slot,
    # no VPU divide.
    sig = 0.5 * (jnp.tanh(0.5 * cos) + 1.0)

    lab = labels_ref[...]                                         # (bt, 1)
    # NOTE: parenthesisation reproduces the PyTorch source exactly:
    #   sigmoid(s)*y + (1 - sigmoid(s)*(1 - y))
    terms = sig * lab + (1.0 - sig * (1.0 - lab))                 # (bt, 1)

    # Mask rows past the true batch (batch axis was zero-padded to the grid).
    blk = c * blocks_per_core + j
    row = blk * batch_block + lax.broadcasted_iota(
        jnp.int32, (batch_block, 1), 0)
    terms = jnp.where(row < batch_size, terms, 0.0)

    acc_ref[...] += jnp.sum(terms, axis=0, keepdims=True)         # (1, 1)

    @pl.when(j == pl.num_programs(1) - 1)
    def _():
        # Single lane-dense (8,128) store per core; wrapper reads row c*8, lane 0.
        out_ref[...] = jnp.broadcast_to(acc_ref[...], out_ref.shape)


def tuple_loss(spk_representation, labels, batch_size, tuple_size):
    """Pallas implementation of TupleLoss.forward. Returns a scalar float32."""
    n, feature_size = spk_representation.shape
    assert n == batch_size * tuple_size
    assert tuple_size >= 2, "TupleLoss needs at least one enrolment utterance"

    # (B*T, F) -> (B, T, F); no feature padding (block covers full (T, F)).
    x = spk_representation.astype(jnp.float32).reshape(
        batch_size, tuple_size, feature_size)
    lab = labels.astype(jnp.float32).reshape(batch_size, 1)

    # Batch tile: largest multiple-of-8 row count keeping each input buffer
    # ~<=2 MiB (x2 for double buffering -> comfortably inside v5e's 16 MiB
    # scoped-VMEM default and v7x's 64 MiB physical VMEM).
    bytes_per_row = tuple_size * feature_size * 4
    bt = (2 * 1024 * 1024) // max(bytes_per_row, 1)
    bt = max(8, min(1024, (bt // 8) * 8))
    bt = min(bt, ((batch_size + 7) // 8) * 8)

    total_blocks = pl.cdiv(batch_size, bt)
    # Two independent partial sums when there is enough work: lets the
    # "parallel" axis shard across both v7x TensorCores (sequential & nearly
    # free on single-TC v5e/v6e).
    num_parallel = 2 if total_blocks >= 2 else 1
    blocks_per_core = pl.cdiv(total_blocks, num_parallel)
    b_pad = num_parallel * blocks_per_core * bt

    if b_pad != batch_size:
        x = jnp.pad(x, ((0, b_pad - batch_size), (0, 0), (0, 0)))
        lab = jnp.pad(lab, ((0, b_pad - batch_size), (0, 0)))

    kernel = partial(_tuple_loss_kernel,
                     batch_size=batch_size, tuple_size=tuple_size,
                     batch_block=bt, blocks_per_core=blocks_per_core)

    cost = pl.CostEstimate(
        flops=5 * batch_size * tuple_size * feature_size,
        transcendentals=3 * batch_size,
        bytes_accessed=4 * (batch_size * tuple_size * feature_size
                            + batch_size + 8 * 128 * num_parallel))

    partials = pl.pallas_call(
        kernel,
        out_shape=jax.ShapeDtypeStruct((8 * num_parallel, 128), jnp.float32),
        grid_spec=pltpu.PrefetchScalarGridSpec(
            num_scalar_prefetch=0,
            grid=(num_parallel, blocks_per_core),
            in_specs=[
                pl.BlockSpec((bt, 1),
                             lambda c, j: (c * blocks_per_core + j, 0)),
                pl.BlockSpec((bt, tuple_size, feature_size),
                             lambda c, j: (c * blocks_per_core + j, 0, 0)),
            ],
            out_specs=pl.BlockSpec((8, 128), lambda c, j: (c, 0)),
            scratch_shapes=[pltpu.VMEM((1, 1), jnp.float32)],
        ),
        compiler_params=pltpu.CompilerParams(
            dimension_semantics=("parallel", "arbitrary")),
        cost_estimate=cost,
    )(lab, x)

    # Per-core partial sums sit at rows 0, 8, ...; finish -log(mean) here.
    total = jnp.sum(partials[0::8, 0])
    return -jnp.log(total / jnp.float32(batch_size))


def _tuple_loss_ref(spk_representation, labels, batch_size, tuple_size):
    """Pure-JAX reference mirroring the PyTorch module."""
    f = spk_representation.shape[1]
    w = spk_representation.reshape(batch_size, tuple_size, f)
    eps = 1e-6
    loss = jnp.float32(0.0)
    for b in range(batch_size):
        wi_enroll = w[b, 1:]
        wi_eval = w[b, 0]
        c_k = jnp.mean(wi_enroll, axis=0)
        dot = jnp.sum(c_k * wi_eval)
        denom = (jnp.maximum(jnp.sqrt(jnp.sum(c_k * c_k)), eps) *
                 jnp.maximum(jnp.sqrt(jnp.sum(wi_eval * wi_eval)), eps))
        sig = 1.0 / (1.0 + jnp.exp(-(dot / denom)))
        loss = loss + sig * labels[b] + (1.0 - sig * (1.0 - labels[b]))
    return -jnp.log(loss / batch_size)


if __name__ == "__main__":
    # Small shapes consistent with the module: batch_size=2, tuple_size=8,
    # feature (linear-layer) dimension = 32.
    batch_size = 2
    tuple_size = 8
    feature_size = 32

    key = jax.random.PRNGKey(0)
    k_x, k_lab = jax.random.split(key)
    spk_representation = jax.random.normal(
        k_x, (batch_size * tuple_size, feature_size), dtype=jnp.float32)
    labels = jax.random.bernoulli(k_lab, 0.5, (batch_size,)).astype(jnp.float32)

    loss = tuple_loss(spk_representation, labels, batch_size, tuple_size)
    jax.block_until_ready(loss)

    ref = _tuple_loss_ref(spk_representation, labels, batch_size, tuple_size)
    assert jnp.allclose(loss, ref, rtol=1e-5, atol=1e-5), (loss, ref)
    print("KERNEL_OK")
</pallas_src>

<mosaic_0001>
module attributes {stable_mosaic.version = 11 : i64} {
  func.func @_tuple_loss_kernel(%arg0: i32, %arg1: i32, %arg2: memref<8x1xf32, #tpu.memory_space<vmem>>, %arg3: memref<8x8x32xf32, #tpu.memory_space<vmem>>, %arg4: memref<8x128xf32, #tpu.memory_space<vmem>>, %arg5: memref<1x1xf32, #tpu.memory_space<vmem>>) attributes {dimension_semantics = [#tpu.dimension_semantics<parallel>, #tpu.dimension_semantics<arbitrary>], iteration_bounds = array<i64: 1, 1>, scalar_prefetch = 0 : i64, scratch_operands = 1 : i64, tpu.core_type = #tpu.core_type<tc>, window_params = [{transform_indices = @transform_0, window_bounds = array<i64: 8, 1>}, {transform_indices = @transform_1, window_bounds = array<i64: 8, 8, 32>}, {transform_indices = @transform_2, window_bounds = array<i64: 8, 128>}]} {
    %cst = arith.constant 9.99999997E-7 : f32
    %cst_0 = arith.constant 9.99999997E-7 : f32
    %0 = arith.mulf %cst, %cst_0 : f32
    %c0_i32 = arith.constant 0 : i32
    %1 = arith.cmpi eq, %arg1, %c0_i32 : i32
    %2 = arith.extui %1 : i1 to i32
    %c0_i32_1 = arith.constant 0 : i32
    %3 = arith.cmpi ne, %2, %c0_i32_1 : i32
    scf.if %3 {
      %cst_24 = arith.constant 0.000000e+00 : f32
      %60 = vector.broadcast %cst_24 : f32 to vector<1x1xf32>
      %c0_25 = arith.constant 0 : index
      %c0_26 = arith.constant 0 : index
      %61 = vector.load %arg5[%c0_25, %c0_26] : memref<1x1xf32, #tpu.memory_space<vmem>>, vector<1x1xf32>
      tpu.vector_store %arg5[%c0_25, %c0_26], %60 {strides = array<i32>} : memref<1x1xf32, #tpu.memory_space<vmem>>, vector<1x1xf32>,
    } else {
    }
    %c0 = arith.constant 0 : index
    %c0_2 = arith.constant 0 : index
    %c0_3 = arith.constant 0 : index
    %4 = vector.load %arg3[%c0, %c0_2, %c0_3] : memref<8x8x32xf32, #tpu.memory_space<vmem>>, vector<8x8x32xf32>
    %5 = vector.extract_strided_slice %4 {offsets = [0, 0, 0], sizes = [8, 1, 32], strides = [1, 1, 1]} : vector<8x8x32xf32> to vector<8x1x32xf32>
    %6 = vector.shape_cast %5 : vector<8x1x32xf32> to vector<8x32xf32>
    %cst_4 = arith.constant dense<0.000000e+00> : vector<8x32xf32>
    %7 = vector.multi_reduction <add>, %4, %cst_4 [1] : vector<8x8x32xf32> to vector<8x32xf32>
    %8 = arith.subf %7, %6 : vector<8x32xf32>
    %cst_5 = arith.constant 0.142857149 : f32
    %9 = vector.broadcast %cst_5 : f32 to vector<8x32xf32>
    %10 = arith.mulf %8, %9 : vector<8x32xf32>
    %11 = arith.mulf %10, %6 : vector<8x32xf32>
    %cst_6 = arith.constant dense<0.000000e+00> : vector<8xf32>
    %12 = vector.multi_reduction <add>, %11, %cst_6 [1] : vector<8x32xf32> to vector<8xf32>
    %13 = vector.shape_cast %12 : vector<8xf32> to vector<8x1xf32>
    %14 = arith.mulf %10, %10 : vector<8x32xf32>
    %cst_7 = arith.constant dense<0.000000e+00> : vector<8xf32>
    %15 = vector.multi_reduction <add>, %14, %cst_7 [1] : vector<8x32xf32> to vector<8xf32>
    %16 = vector.shape_cast %15 : vector<8xf32> to vector<8x1xf32>
    %17 = arith.mulf %6, %6 : vector<8x32xf32>
    %cst_8 = arith.constant dense<0.000000e+00> : vector<8xf32>
    %18 = vector.multi_reduction <add>, %17, %cst_8 [1] : vector<8x32xf32> to vector<8xf32>
    %19 = vector.shape_cast %18 : vector<8xf32> to vector<8x1xf32>
    %20 = vector.broadcast %0 : f32 to vector<8x1xf32>
    %21 = arith.maximumf %16, %20 : vector<8x1xf32>
    %22 = vector.broadcast %0 : f32 to vector<8x1xf32>
    %23 = arith.maximumf %19, %22 : vector<8x1xf32>
    %24 = arith.mulf %21, %23 : vector<8x1xf32>
    %25 = math.rsqrt %24 : vector<8x1xf32>
    %26 = arith.mulf %13, %25 : vector<8x1xf32>
    %cst_9 = arith.constant 5.000000e-01 : f32
    %27 = vector.broadcast %cst_9 : f32 to vector<8x1xf32>
    %28 = arith.mulf %27, %26 : vector<8x1xf32>
    %29 = math.tanh %28 : vector<8x1xf32>
    %cst_10 = arith.constant 1.000000e+00 : f32
    %30 = vector.broadcast %cst_10 : f32 to vector<8x1xf32>
    %31 = arith.addf %29, %30 : vector<8x1xf32>
    %cst_11 = arith.constant 5.000000e-01 : f32
    %32 = vector.broadcast %cst_11 : f32 to vector<8x1xf32>
    %33 = arith.mulf %32, %31 : vector<8x1xf32>
    %c0_12 = arith.constant 0 : index
    %c0_13 = arith.constant 0 : index
    %34 = vector.load %arg2[%c0_12, %c0_13] : memref<8x1xf32, #tpu.memory_space<vmem>>, vector<8x1xf32>
    %35 = arith.mulf %33, %34 : vector<8x1xf32>
    %cst_14 = arith.constant 1.000000e+00 : f32
    %36 = vector.broadcast %cst_14 : f32 to vector<8x1xf32>
    %37 = arith.subf %36, %34 : vector<8x1xf32>
    %38 = arith.mulf %33, %37 : vector<8x1xf32>
    %cst_15 = arith.constant 1.000000e+00 : f32
    %39 = vector.broadcast %cst_15 : f32 to vector<8x1xf32>
    %40 = arith.subf %39, %38 : vector<8x1xf32>
    %41 = arith.addf %35, %40 : vector<8x1xf32>
    %c1_i32 = arith.constant 1 : i32
    %42 = arith.muli %arg0, %c1_i32 : i32
    %43 = arith.addi %42, %arg1 : i32
    %c8_i32 = arith.constant 8 : i32
    %44 = arith.muli %43, %c8_i32 : i32
    %45 = tpu.iota {dimensions = array<i32: 0>} : vector<8x1xi32>
    %46 = vector.broadcast %44 : i32 to vector<8x1xi32>
    %47 = arith.addi %46, %45 : vector<8x1xi32>
    %c2_i32 = arith.constant 2 : i32
    %48 = vector.broadcast %c2_i32 : i32 to vector<8x1xi32>
    %49 = arith.cmpi slt, %47, %48 : vector<8x1xi32>
    %cst_16 = arith.constant 0.000000e+00 : f32
    %50 = vector.broadcast %cst_16 : f32 to vector<8x1xf32>
    %51 = arith.select %49, %41, %50 : vector<8x1xi1>, vector<8x1xf32>
    %c0_17 = arith.constant 0 : index
    %c0_18 = arith.constant 0 : index
    %52 = vector.load %arg5[%c0_17, %c0_18] : memref<1x1xf32, #tpu.memory_space<vmem>>, vector<1x1xf32>
    %cst_19 = arith.constant dense<0.000000e+00> : vector<1xf32>
    %53 = vector.multi_reduction <add>, %51, %cst_19 [0] : vector<8x1xf32> to vector<1xf32>
    %54 = vector.shape_cast %53 : vector<1xf32> to vector<1x1xf32>
    %55 = arith.addf %52, %54 : vector<1x1xf32>
    %c0_20 = arith.constant 0 : index
    %c0_21 = arith.constant 0 : index
    %56 = vector.load %arg5[%c0_20, %c0_21] : memref<1x1xf32, #tpu.memory_space<vmem>>, vector<1x1xf32>
    tpu.vector_store %arg5[%c0_20, %c0_21], %55 {strides = array<i32>} : memref<1x1xf32, #tpu.memory_space<vmem>>, vector<1x1xf32>,
    %c0_i32_22 = arith.constant 0 : i32
    %57 = arith.cmpi eq, %arg1, %c0_i32_22 : i32
    %58 = arith.extui %57 : i1 to i32
    %c0_i32_23 = arith.constant 0 : i32
    %59 = arith.cmpi ne, %58, %c0_i32_23 : i32
    scf.if %59 {
      %c0_24 = arith.constant 0 : index
      %c0_25 = arith.constant 0 : index
      %60 = vector.load %arg5[%c0_24, %c0_25] : memref<1x1xf32, #tpu.memory_space<vmem>>, vector<1x1xf32>
      %61 = vector.shape_cast %60 : vector<1x1xf32> to vector<1x1xf32>
      %62 = vector.broadcast %61 : vector<1x1xf32> to vector<8x128xf32>
      %c0_26 = arith.constant 0 : index
      %c0_27 = arith.constant 0 : index
      %63 = vector.load %arg4[%c0_26, %c0_27] : memref<8x128xf32, #tpu.memory_space<vmem>>, vector<8x128xf32>
      tpu.vector_store %arg4[%c0_26, %c0_27], %62 {strides = array<i32>} : memref<8x128xf32, #tpu.memory_space<vmem>>, vector<8x128xf32>,
    } else {
    }
    return
  }
  func.func @transform_0(%arg0: i32, %arg1: i32) -> (i32, i32) {
    %c1_i32 = arith.constant 1 : i32
    %0 = arith.muli %arg0, %c1_i32 : i32
    %1 = arith.addi %0, %arg1 : i32
    %c0_i32 = arith.constant 0 : i32
    %c0_i32_0 = arith.constant 0 : i32
    return %1, %c0_i32 : i32, i32
  }
  func.func @transform_1(%arg0: i32, %arg1: i32) -> (i32, i32, i32) {
    %c1_i32 = arith.constant 1 : i32
    %0 = arith.muli %arg0, %c1_i32 : i32
    %1 = arith.addi %0, %arg1 : i32
    %c0_i32 = arith.constant 0 : i32
    %c0_i32_0 = arith.constant 0 : i32
    %c0_i32_1 = arith.constant 0 : i32
    return %1, %c0_i32, %c0_i32_0 : i32, i32, i32
  }
  func.func @transform_2(%arg0: i32, %arg1: i32) -> (i32, i32) {
    %c0_i32 = arith.constant 0 : i32
    %c0_i32_0 = arith.constant 0 : i32
    return %arg0, %c0_i32 : i32, i32
  }
}

</mosaic_0001>

<bundles_post_ra>
// kernel: tpu_custom_call.1
= control target key start
LH: loop header
LB: loop body
LE: loop exit
PB: predicated region body
PF: predicated region fallthrough
CT: control target
= control target key end

     0   :  { %7 = vsyncpa [#allocation4], 0  ;;  %s517_s0 = inlined_call_operand.vmem [shape: f32[8,1], index: 0, kind: input, shape index: {}]   ;;  %s518_s1 = inlined_call_operand.hbm [shape: f32[8,8,32], index: 1, kind: input, shape index: {}]   ;;  %s519_s2 = inlined_call_operand.hbm [shape: f32[8,128], index: 2, kind: output, shape index: {}]  }
   0x1   :  { %8 = vsyncpa [#allocation5], 0  ;;  %s376_s9 = smov [#allocation3]   ;;  %s328_s13 = scalar_lea.hbm %s518_s1, 1024 }
   0x2   :  { %s26_s10 = sshll.u32 %s376_s9, 4  ;;  %p329_p0 = scmp.ne.s32.totalorder %s518_s1, %s328_s13  ;;  %s27_s10 = int_to_ptr.vmem [resolvable:$true] %s26_s10 }
   0x3   :  { %p332_p1 = scmp.lt.u32.totalorder %s328_s13, %s518_s1 }
   0x5   :  { %p334_p2 = pnand %p332_p1, %p329_p0 }
   0x7   :  { %337 = shalt.err (!%p334_p2)
}
   0x8   :  { %s338_s18 = scalar_lea.vmem %s27_s10, 1024  ;;  %p343_p4 = scmp.lt.s32.totalorder %s27_s10, %s27_s10 }
   0x9   :  { %p339_p3 = scmp.ne.s32.totalorder %s27_s10, %s338_s18  ;;  %p344_p5 = scmp.lt.s32.totalorder %s338_s18, %s338_s18 }
   0xb   :  { %p345_p6 = por %p344_p5, %p343_p4 }
   0xd   :  { %p346_p7 = pnand %p345_p6, %p339_p3 }
   0xf   :  { %349 = shalt.err (!%p346_p7)
}
  0x10   :  { %s377_s19 = smov 128   ;;  %s378_s20 = smov 8  }
  0x11   :  { %32 = dma.hbm_to_vmem [thread:$0]  %s518_s1, 1024, %s27_s10, [#allocation4], %s377_s19, %s377_s19, %s378_s20  }
  0x12   :  { %372 = dma.done.wait [#allocation4], 1024  }
  0x13   :  { %373 = vsyncadd [#allocation4], 4294966272  ;;  %vm63_vm0 = vcmask 261120   ;;  %v409_v0 = vld [vmem:[#allocation3] sm:$0xff]  ;;  %v411_v1 = vld [vmem:[#allocation3 + $0x8] sm:$0xff]  ;;  %vm153_vm1 = vcmask 1041409  }
  0x14   :  { %v413_v2 = vld [vmem:[#allocation3 + $0x10] sm:$0xff]  ;;  %v415_v3 = vld [vmem:[#allocation3 + $0x18] sm:$0xff]  ;;  %v417_v4 = vld [vmem:[#allocation3 + $0x20] sm:$0xff]  ;;  %v64_v6 = vsel %vm63_vm0, %v409_v0, 0.0  ;;  %v71_v7 = vsel %vm63_vm0, %v411_v1, 0.0  ;;  %v429_v9 = vmul.f32 %v409_v0, %v409_v0  ;;  %vm156_vm2 = vcmask 1042434  }
  0x15   :  { %v419_v5 = vld [vmem:[#allocation3 + $0x28] sm:$0xff]  ;;  %v78_v8 = vsel %vm63_vm0, %v413_v2, 0.0  ;;  %v431_v10 = vld [vmem:[#allocation3 + $0x30] sm:$0xff]  ;;  %v433_v11 = vld [vmem:[#allocation3 + $0x38] sm:$0xff]  ;;  %v65_v12 = vrot.slane %v64_v6, 4  ;;  %v72_v13 = vrot.slane %v71_v7, 4 }
  0x16   :  { %v79_v14 = vrot.slane %v78_v8, 4  ;;  %v85_v15 = vsel %vm63_vm0, %v415_v3, 0.0  ;;  %v92_v17 = vsel %vm63_vm0, %v417_v4, 0.0  ;;  %v99_v18 = vsel %vm63_vm0, %v419_v5, 0.0 }
  0x17   :  { %v86_v16 = vrot.slane %v85_v15, 4  ;;  %v106_v19 = vsel %vm63_vm0, %v431_v10, 0.0  ;;  %v66_v20 = vadd.f32 %v65_v12, %v64_v6  ;;  %v73_v21 = vadd.f32 %v72_v13, %v71_v7 }
  0x18   :  { %v80_v22 = vadd.f32 %v79_v14, %v78_v8  ;;  %v93_v23 = vrot.slane %v92_v17, 4  ;;  %v100_v25 = vrot.slane %v99_v18, 4  ;;  %v107_v26 = vrot.slane %v106_v19, 4 }
  0x19   :  { %v87_v24 = vadd.f32 %v86_v16, %v85_v15  ;;  %v113_v27 = vsel %vm63_vm0, %v433_v11, 0.0  ;;  %v67_v28 = vrot.slane %v66_v20, 2  ;;  %v74_v29 = vrot.slane %v73_v21, 2 }
  0x1a   :  { %v81_v30 = vrot.slane %v80_v22, 2  ;;  %v94_v31 = vadd.f32 %v93_v23, %v92_v17  ;;  %v101_v33 = vadd.f32 %v100_v25, %v99_v18  ;;  %v108_v34 = vadd.f32 %v107_v26, %v106_v19 }
  0x1b   :  { %v88_v32 = vrot.slane %v87_v24, 2  ;;  %v114_v35 = vrot.slane %v113_v27, 4  ;;  %v68_v36 = vadd.f32 %v67_v28, %v66_v20  ;;  %v75_v37 = vadd.f32 %v74_v29, %v73_v21 }
  0x1c   :  { %v82_v38 = vadd.f32 %v81_v30, %v80_v22  ;;  %v95_v39 = vrot.slane %v94_v31, 2  ;;  %v102_v41 = vrot.slane %v101_v33, 2  ;;  %v109_v42 = vrot.slane %v108_v34, 2 }
  0x1d   :  { %v89_v40 = vadd.f32 %v88_v32, %v87_v24  ;;  %v115_v43 = vadd.f32 %v114_v35, %v113_v27  ;;  %v69_v44 = vrot.slane %v68_v36, 1  ;;  %v76_v45 = vrot.slane %v75_v37, 1 }
  0x1e   :  { %v83_v46 = vrot.slane %v82_v38, 1  ;;  %v96_v47 = vadd.f32 %v95_v39, %v94_v31  ;;  %v103_v49 = vadd.f32 %v102_v41, %v101_v33  ;;  %v110_v50 = vadd.f32 %v109_v42, %v108_v34 }
  0x1f   :  { %v90_v48 = vrot.slane %v89_v40, 1  ;;  %v116_v51 = vrot.slane %v115_v43, 2  ;;  %v70_v52 = vadd.f32 %v69_v44, %v68_v36  ;;  %v77_v53 = vadd.f32 %v76_v45, %v75_v37 }
  0x20   :  { %v84_v54 = vadd.f32 %v83_v46, %v82_v38  ;;  %v97_v55 = vrot.slane %v96_v47, 1  ;;  %v104_v57 = vrot.slane %v103_v49, 1  ;;  %v111_v58 = vrot.slane %v110_v50, 1 }
  0x21   :  { %v91_v56 = vadd.f32 %v90_v48, %v89_v40  ;;  %v117_v59 = vadd.f32 %v116_v51, %v115_v43  ;;  %vm159_vm3 = vcmask 1043459   ;;  %v120_v61 = vsub.f32 %v70_v52, %v409_v0 }
  0x22   :  { %v98_v60 = vadd.f32 %v97_v55, %v96_v47  ;;  %v121_v62 = vsub.f32 %v77_v53, %v411_v1  ;;  %v122_v63 = vsub.f32 %v84_v54, %v413_v2  ;;  %vm162_vm4 = vcmask 1044484  }
  0x23   :  { %v105_v6 = vadd.f32 %v104_v57, %v103_v49  ;;  %v112_v7 = vadd.f32 %v111_v58, %v110_v50  ;;  %v118_v8 = vrot.slane %v117_v59, 1  ;;  %v123_v12 = vsub.f32 %v91_v56, %v415_v3 }
  0x24   :  { %vm165_vm5 = vcmask 1045509   ;;  %v124_v13 = vsub.f32 %v98_v60, %v417_v4  ;;  %v128_v14 = vmul.f32 0.14285715, %v120_v61  ;;  %v129_v15 = vmul.f32 0.14285715, %v121_v62 }
  0x25   :  { %v130_v16 = vmul.f32 0.14285715, %v122_v63  ;;  %vm168_vm6 = vcmask 1046534   ;;  %v119_v17 = vadd.f32 %v118_v8, %v117_v59  ;;  %v125_v18 = vsub.f32 %v105_v6, %v419_v5 }
  0x26   :  { %v126_v19 = vsub.f32 %v112_v7, %v431_v10  ;;  %v131_v20 = vmul.f32 0.14285715, %v123_v12  ;;  %vm171_vm7 = vcmask 1047559   ;;  %v132_v21 = vmul.f32 0.14285715, %v124_v13 }
  0x27   :  { %v177_v22 = vmul.f32 %v128_v14, %v128_v14  ;;  %v178_v23 = vmul.f32 %v129_v15, %v129_v15  ;;  %v179_v24 = vmul.f32 %v130_v16, %v130_v16  ;;  %v127_v25 = vsub.f32 %v119_v17, %v433_v11 }
  0x28   :  { %v133_v26 = vmul.f32 0.14285715, %v125_v18  ;;  %v134_v27 = vmul.f32 0.14285715, %v126_v19  ;;  %v180_v28 = vmul.f32 %v131_v20, %v131_v20  ;;  %v181_v29 = vmul.f32 %v132_v21, %v132_v21 }
  0x29   :  { %v193_v30 = vrot.slane %v178_v23, 7  ;;  %v195_v31 = vrot.slane %v179_v24, 6  ;;  %v212_v32 = vmul.f32 %v411_v1, %v411_v1  ;;  %v135_v33 = vmul.f32 0.14285715, %v127_v25 }
  0x2a   :  { %v182_v34 = vmul.f32 %v133_v26, %v133_v26  ;;  %v183_v35 = vmul.f32 %v134_v27, %v134_v27  ;;  %v197_v36 = vrot.slane %v180_v28, 5  ;;  %v199_v38 = vrot.slane %v181_v29, 4 }
  0x2b   :  { %v194_v37 = vsel %vm153_vm1, %v193_v30, %v177_v22  ;;  %v213_v39 = vmul.f32 %v413_v2, %v413_v2  ;;  %v214_v40 = vmul.f32 %v415_v3, %v415_v3  ;;  %v184_v41 = vmul.f32 %v135_v33, %v135_v33 }
  0x2c   :  { %v196_v42 = vsel %vm156_vm2, %v195_v31, %v194_v37  ;;  %v201_v43 = vrot.slane %v182_v34, 3  ;;  %v203_v44 = vrot.slane %v183_v35, 2  ;;  %v215_v46 = vmul.f32 %v417_v4, %v417_v4 }
  0x2d   :  { %v198_v45 = vsel %vm159_vm3, %v197_v36, %v196_v42  ;;  %v216_v47 = vmul.f32 %v419_v5, %v419_v5  ;;  %v217_v48 = vmul.f32 %v431_v10, %v431_v10  ;;  %v205_v50 = vrot.slane %v184_v41, 1  ;;  %v254_v41 = vld [vmem:[%s517_s0] sm:$0xff]  ;;  %s381_s0 = smov [#allocation6]  }
  0x2e   :  { %v200_v49 = vsel %vm162_vm4, %v199_v38, %v198_v45  ;;  %v218_v51 = vmul.f32 %v433_v11, %v433_v11  ;;  %v227_v52 = vrot.slane %v212_v32, 7  ;;  %v229_v54 = vrot.slane %v213_v39, 6  ;;  %s300_s24 = sshll.u32 %s381_s0, 4  ;;  %s301_s24 = int_to_ptr.vmem [resolvable:$true] %s300_s24 }
  0x2f   :  { %v202_v53 = vsel %vm165_vm5, %v201_v43, %v200_v49  ;;  %v231_v55 = vrot.slane %v214_v40, 5  ;;  %v233_v56 = vrot.slane %v215_v46, 4  ;;  %v235_v59 = vrot.slane %v216_v47, 3  ;;  %s350_s25 = scalar_lea.vmem %s301_s24, 128  ;;  %p355_p9 = scmp.lt.s32.totalorder %s301_s24, %s301_s24 }
  0x30   :  { %v204_v57 = vsel %vm168_vm6, %v203_v44, %v202_v53  ;;  %v228_v58 = vsel %vm153_vm1, %v227_v52, %v429_v9  ;;  %v237_v60 = vrot.slane %v217_v48, 2  ;;  %v239_v63 = vrot.slane %v218_v51, 1  ;;  %p351_p8 = scmp.ne.s32.totalorder %s301_s24, %s350_s25  ;;  %p356_p10 = scmp.lt.s32.totalorder %s350_s25, %s350_s25 }
  0x31   :  { %v206_v61 = vsel %vm171_vm7, %v205_v50, %v204_v57  ;;  %v230_v62 = vsel %vm156_vm2, %v229_v54, %v228_v58  ;;  %v136_v6 = vmul.f32 %v128_v14, %v409_v0  ;;  %v137_v12 = vmul.f32 %v129_v15, %v411_v1 }
  0x32   :  { %v208_v7 = vsel %vm63_vm0, %v206_v61, 0.0  ;;  %v232_v8 = vsel %vm159_vm3, %v231_v55, %v230_v62  ;;  %v138_v13 = vmul.f32 %v130_v16, %v413_v2  ;;  %v139_v17 = vmul.f32 %v131_v20, %v415_v3  ;;  %p357_p11 = por %p356_p10, %p355_p9 }
  0x33   :  { %209 = vadd.xlane.f32.xlu0 %v208_v7  ;;  %v234_v9 = vsel %vm162_vm4, %v233_v56, %v232_v8  ;;  %v140_v18 = vmul.f32 %v132_v21, %v417_v4  ;;  %v141_v19 = vmul.f32 %v133_v26, %v419_v5  ;;  %v142_v0 = vmul.f32 %v134_v27, %v431_v10 }
  0x34   :  { %v236_v22 = vsel %vm165_vm5, %v235_v59, %v234_v9  ;;  %v143_v14 = vmul.f32 %v135_v33, %v433_v11  ;;  %v152_v23 = vrot.slane %v137_v12, 7  ;;  %v155_v15 = vrot.slane %v138_v13, 6  ;;  %p358_p12 = pnand %p357_p11, %p351_p8 }
  0x35   :  { %v238_v1 = vsel %vm168_vm6, %v237_v60, %v236_v22  ;;  %v158_v2 = vrot.slane %v139_v17, 5  ;;  %v161_v16 = vrot.slane %v140_v18, 4  ;;  %v164_v20 = vrot.slane %v141_v19, 3 }
  0x36   :  { %v240_v24 = vsel %vm171_vm7, %v239_v63, %v238_v1  ;;  %v154_v3 = vsel %vm153_vm1, %v152_v23, %v136_v6  ;;  %v167_v21 = vrot.slane %v142_v0, 2  ;;  %v170_v11 = vrot.slane %v143_v14, 1 }
  0x37   :  { %v242_v4 = vsel %vm63_vm0, %v240_v24, 0.0  ;;  %v157_v5 = vsel %vm156_vm2, %v155_v15, %v154_v3  ;;  %vm53_vm8 = vcmask 0   ;;  %v379_v30 = vmov 0.0  }
  0x38   :  { %243 = vadd.xlane.f32.xlu0 %v242_v4  ;;  %v160_v10 = vsel %vm159_vm3, %v158_v2, %v157_v5  ;;  %54 = vst.msk [vmem:[#allocation2] sm:$0x1] %vm53_vm8, %v379_v30  ;;  %v380_v31 = vmov 0   ;;  %v262_v43 = vlaneseq  ;;  %v256_v44 = vsub.f32 1.0, %v254_v41 }
  0x39   :  { %v163_v25 = vsel %vm162_vm4, %v161_v16, %v160_v10  ;;  %322 = vset.pattern.permute.xlu1 %v380_v31  ;;  %323 = vset.pattern.permute.xlu0 %v380_v31  ;;  %vm269_vm10 = vcmask 7168  }
  0x3a   :  { %v166_v26 = vsel %vm165_vm5, %v164_v20, %v163_v25  ;;  %v263_v47 = vshrl.u32 %v262_v43, 7 }
  0x3b   :  { %v169_v27 = vsel %vm168_vm6, %v167_v21, %v166_v26 }
  0x3c   :  { %v172_v28 = vsel %vm171_vm7, %v170_v11, %v169_v27  ;;  %vm266_vm9 = vcmp.lt.s32.totalorder %v263_v47, 2 }
  0x3d   :  { %v174_v29 = vsel %vm63_vm0, %v172_v28, 0.0 }
  0x3e   :  { %175 = vadd.xlane.f32.xlu1 %v174_v29 }
  0x3f   :  { %v268_v59 = vld [vmem:[#allocation2] sm:$0x1] }
  0xc0   :  { %v210_v32 = vpop.xlane.xlu0 %209 }
  0xc1   :  { %v245_v34 = vmax.f32 %v210_v32, 1e-12 }
  0xc5   :  { %v244_v33 = vpop.xlane.xlu0 %243 }
  0xc6   :  { %v246_v35 = vmax.f32 %v244_v33, 1e-12 }
  0xc8   :  { %v247_v36 = vmul.f32 %v246_v35, %v245_v34 }
  0xca   :  { %324 = vrsqrt.f32 %v247_v36 }
  0xcb   :  { %v176_v37 = vpop.xlane.xlu1 %175 }
  0xd4   :  { %v325_v38 = vpop.eup %324 }
  0xd5   :  { %v249_v39 = vmul.f32 %v325_v38, %v176_v37 }
  0xd7   :  { %v250_v40 = vmul.f32 0.5, %v249_v39 }
  0xd9   :  { %326 = vtanh.f32 %v250_v40 }
  0xe3   :  { %v327_v42 = vpop.eup %326 }
  0xe4   :  { %v252_v45 = vadd.f32 1.0, %v327_v42 }
  0xe6   :  { %v253_v46 = vmul.f32 0.5, %v252_v45 }
  0xe8   :  { %v257_v48 = vmul.f32 %v256_v44, %v253_v46  ;;  %v255_v49 = vmul.f32 %v254_v41, %v253_v46 }
  0xea   :  { %v258_v50 = vsub.f32 1.0, %v257_v48 }
  0xec   :  { %v259_v51 = vadd.f32 %v258_v50, %v255_v49 }
  0xee   :  { %v267_v52 = vsel %vm266_vm9, %v259_v51, 0.0 }
  0xef   :  { %v270_v53 = vsel %vm269_vm10, %v267_v52, 0.0 }
  0xf0   :  { %v271_v54 = vrot.slane %v270_v53, 4 }
  0xf2   :  { %v272_v55 = vadd.f32 %v271_v54, %v270_v53 }
  0xf4   :  { %v273_v56 = vrot.slane %v272_v55, 2 }
  0xf6   :  { %v274_v57 = vadd.f32 %v273_v56, %v272_v55 }
  0xf8   :  { %v275_v58 = vrot.slane %v274_v57, 1 }
  0xfa   :  { %v276_v60 = vadd.f32 %v275_v58, %v274_v57 }
  0xfc   :  { %v277_v61 = vadd.f32 %v276_v60, %v268_v59 }
  0xfe   :  { %279 = vst.msk [vmem:[#allocation2] sm:$0x1] %vm53_vm8, %v277_v61 }
 0x105   :  { %v315_v62 = vld [vmem:[#allocation2] ss:$0 sm:$0xff] }
 0x106   :  { %290 = vperm.xlu1 %322, %v315_v62  }
 0x185   :  { %v291_v63 = vpop.permute.xlu1 %290 }
 0x186   :  { %293 = vst [vmem:[#allocation6] sm:$0xff] %v291_v63 }
 0x187   :  { %361 = shalt.err (!%p358_p12)
}
 0x188   :  { %s362_s28 = scalar_lea.hbm %s519_s2, 128 }
 0x189   :  { %p363_p13 = scmp.ne.s32.totalorder %s519_s2, %s362_s28  ;;  %p366_p0 = scmp.lt.u32.totalorder %s362_s28, %s519_s2 }
 0x18b   :  { %p368_p1 = pnand %p366_p0, %p363_p13 }
 0x18d   :  { %371 = shalt.err (!%p368_p1)
}
 0x18e   :  { %303 = dma.vmem_to_hbm [thread:$0]  %s301_s24, 128, %s519_s2, [#allocation5]  }
 0x18f   :  { %374 = dma.done.wait [#allocation5], 128  }
 0x190   :  { %375 = vsyncadd [#allocation5], 4294967168 }
 0x191   :  { %307 = vsyncpa [#allocation4], 1 }
 0x192   :  { %308 = vsyncpa [#allocation5], 1 }

</bundles_post_ra>
